<compile_context>
chip_gen: v7x
topology: tpu7x:2x2x1
jax: 0.10.0
libtpu: 0.0.40
codegen_flags: <defaults>
</compile_context>

<pallas_src>
import functools

import jax
import jax.numpy as jnp
from jax.experimental import pallas as pl
from jax.experimental.pallas import tpu as pltpu


def _hardtanh_kernel(x_ref, o_ref, *, min_val, max_val):
    x = x_ref[...]
    lo = jnp.asarray(min_val, dtype=x.dtype)
    hi = jnp.asarray(max_val, dtype=x.dtype)
    # Element-wise clamp: pure VPU work, memory-bound end to end.
    o_ref[...] = jnp.minimum(jnp.maximum(x, lo), hi).astype(o_ref.dtype)


def _sublanes_for(dtype):
    itemsize = jnp.dtype(dtype).itemsize
    packing = max(1, 4 // max(1, itemsize))   # f32 -> 1, bf16 -> 2, int8/fp8 -> 4
    return 8 * packing


def _default_target_block_bytes():
    # v7x: bigger blocks to amortize ~0.35us/step at ~3.2 TB/s; 4 MiB blocks
    # double-buffered in+out = 16 MiB, still inside the 32 MiB scoped default.
    # v5e/v6e: 2 MiB blocks (8 MiB double-buffered) stay inside v5e's 16 MiB.
    try:
        kind = jax.devices()[0].device_kind.lower()
    except Exception:
        kind = ""
    if "v7" in kind:
        return 4 * 1024 * 1024
    return 2 * 1024 * 1024


def _round_up(a, b):
    return ((a + b - 1) // b) * b


def _hardtanh_2d(x2d, min_val, max_val, *, target_block_bytes=None, inplace=False):
    """Run the clamp kernel on a 2-D view whose last dim is lane friendly."""
    R, C = x2d.shape
    dtype = x2d.dtype
    itemsize = jnp.dtype(dtype).itemsize
    sublanes = _sublanes_for(dtype)
    if target_block_bytes is None:
        target_block_bytes = _default_target_block_bytes()

    # Column blocking: lane-dense (callers guarantee C % 128 == 0 when C > 2048).
    bc = C if C <= 2048 else 2048

    # Row blocking: ~target_block_bytes per block, sublane-aligned, and capped
    # at ~half the rows so the "parallel" grid has >= 2 steps when possible
    # (lets a v7x megacore split the stream across both TensorCores).
    if R <= sublanes:
        br = R  # block equals full dim -> always a legal layout
    else:
        br = max(sublanes, (target_block_bytes // (bc * itemsize)) // sublanes * sublanes)
        half_up = _round_up(pl.cdiv(R, 2), sublanes)
        br = min(br, half_up)

    grid = (pl.cdiv(R, br), pl.cdiv(C, bc))

    kernel = functools.partial(
        _hardtanh_kernel, min_val=float(min_val), max_val=float(max_val)
    )

    return pl.pallas_call(
        kernel,
        out_shape=jax.ShapeDtypeStruct((R, C), dtype),
        grid_spec=pltpu.PrefetchScalarGridSpec(
            num_scalar_prefetch=0,
            grid=grid,
            in_specs=[pl.BlockSpec((br, bc), lambda i, j: (i, j))],
            out_specs=pl.BlockSpec((br, bc), lambda i, j: (i, j)),
        ),
        compiler_params=pltpu.CompilerParams(
            dimension_semantics=("parallel", "parallel"),
        ),
        input_output_aliases=({0: 0} if inplace else {}),
    )(x2d)


def hardtanh(x, min_val=-1.0, max_val=1.0, *, target_block_bytes=None, inplace=False):
    """Element-wise HardTanh via a Pallas TPU kernel. Same shape/dtype as x.

    NOTE: for integer dtypes the bounds are cast to x.dtype (fractional bounds
    truncate), matching clamp-with-cast semantics.
    """
    assert max_val > min_val
    orig_shape = x.shape
    n = x.size
    if n == 0:
        return x

    # Fast path 1: natural layout already lane friendly -> collapse leading
    # dims (zero-cost reshape, last dim untouched).
    if x.ndim >= 2 and orig_shape[-1] % 128 == 0:
        out2d = _hardtanh_2d(
            x.reshape(-1, orig_shape[-1]), min_val, max_val,
            target_block_bytes=target_block_bytes, inplace=inplace)
        return out2d.reshape(orig_shape)

    flat = x.reshape(-1)

    # Fast path 2: total size divides a lane-dense width exactly -> no padding.
    if n % 128 == 0:
        C = 512 if n % 512 == 0 else (256 if n % 256 == 0 else 128)
        out2d = _hardtanh_2d(
            flat.reshape(-1, C), min_val, max_val,
            target_block_bytes=target_block_bytes, inplace=inplace)
        return out2d.reshape(orig_shape)

    # General path: no whole-array pad/slice. Kernel on the 128-aligned bulk,
    # clamp the tiny (<128 element) tail directly.
    # TODO(synk): fold the ragged tail into the kernel (scalar-prefetched true
    # length + masked store) to also remove the concatenate copy.
    lo = jnp.asarray(min_val, dtype=x.dtype)
    hi = jnp.asarray(max_val, dtype=x.dtype)
    n_bulk = (n // 128) * 128
    if n_bulk == 0:
        return jnp.clip(flat, lo, hi).reshape(orig_shape)
    bulk = _hardtanh_2d(
        flat[:n_bulk].reshape(-1, 128), min_val, max_val,
        target_block_bytes=target_block_bytes).reshape(-1)
    tail = jnp.clip(flat[n_bulk:], lo, hi)
    return jnp.concatenate([bulk, tail]).reshape(orig_shape)


if __name__ == "__main__":
    key = jax.random.PRNGKey(0)
    # Input (N, *) — NCHW-like example shape (2, 4, 16, 16), scaled so both
    # clamp branches and the linear region are exercised.
    x = jax.random.normal(key, (2, 4, 16, 16), dtype=jnp.float32) * 2.0

    # Default Hardtanh: [-1, 1]
    y = jax.block_until_ready(hardtanh(x))
    ref = jnp.clip(x, -1.0, 1.0)
    assert y.shape == x.shape and y.dtype == x.dtype
    assert jnp.allclose(y, ref)

    # Adjusted linear region like the docstring example: Hardtanh(-2, 2)
    y2 = jax.block_until_ready(hardtanh(x, min_val=-2.0, max_val=2.0))
    assert jnp.allclose(y2, jnp.clip(x, -2.0, 2.0))

    # bf16 input exercises the dtype-aware sublane/block sizing.
    xb = x.astype(jnp.bfloat16)
    yb = jax.block_until_ready(hardtanh(xb))
    assert yb.dtype == jnp.bfloat16
    assert jnp.allclose(yb, jnp.clip(xb, jnp.bfloat16(-1.0), jnp.bfloat16(1.0)))

    # Misaligned size exercises the bulk+tail path (no whole-array pad/slice).
    x3 = jax.random.normal(jax.random.PRNGKey(1), (5, 300), dtype=jnp.float32) * 2.0
    y3 = jax.block_until_ready(hardtanh(x3))
    assert y3.shape == x3.shape
    assert jnp.allclose(y3, jnp.clip(x3, -1.0, 1.0))

    print("KERNEL_OK")
</pallas_src>

<mosaic_0001>
module attributes {stable_mosaic.version = 11 : i64} {
  func.func @_hardtanh_kernel(%arg0: i32, %arg1: i32, %arg2: memref<4x512xf32, #tpu.memory_space<vmem>>, %arg3: memref<4x512xf32, #tpu.memory_space<vmem>>) attributes {dimension_semantics = [#tpu.dimension_semantics<parallel>, #tpu.dimension_semantics<parallel>], iteration_bounds = array<i64: 1, 1>, scalar_prefetch = 0 : i64, scratch_operands = 0 : i64, tpu.core_type = #tpu.core_type<tc>, window_params = [{transform_indices = @transform_0, window_bounds = array<i64: 4, 512>}, {transform_indices = @transform_1, window_bounds = array<i64: 4, 512>}]} {
    %c0 = arith.constant 0 : index
    %c0_0 = arith.constant 0 : index
    %0 = vector.load %arg2[%c0, %c0_0] : memref<4x512xf32, #tpu.memory_space<vmem>>, vector<4x512xf32>
    %cst = arith.constant -1.000000e+00 : f32
    %1 = vector.broadcast %cst : f32 to vector<4x512xf32>
    %2 = arith.maximumf %0, %1 : vector<4x512xf32>
    %cst_1 = arith.constant 1.000000e+00 : f32
    %3 = vector.broadcast %cst_1 : f32 to vector<4x512xf32>
    %4 = arith.minimumf %2, %3 : vector<4x512xf32>
    %c0_2 = arith.constant 0 : index
    %c0_3 = arith.constant 0 : index
    %5 = vector.load %arg3[%c0_2, %c0_3] : memref<4x512xf32, #tpu.memory_space<vmem>>, vector<4x512xf32>
    tpu.vector_store %arg3[%c0_2, %c0_3], %4 {strides = array<i32>} : memref<4x512xf32, #tpu.memory_space<vmem>>, vector<4x512xf32>,
    return
  }
  func.func @transform_0(%arg0: i32, %arg1: i32) -> (i32, i32) {
    %c0_i32 = arith.constant 0 : i32
    return %arg0, %arg1 : i32, i32
  }
  func.func @transform_1(%arg0: i32, %arg1: i32) -> (i32, i32) {
    %c0_i32 = arith.constant 0 : i32
    return %arg0, %arg1 : i32, i32
  }
}

</mosaic_0001>

<bundles_post_ra>
// kernel: tpu_custom_call.1
= control target key start
LH: loop header
LB: loop body
LE: loop exit
PB: predicated region body
PF: predicated region fallthrough
CT: control target
= control target key end

     0   :  { %6 = vsyncpa [#allocation3], 0  ;;  %s132_s0 = inlined_call_operand.hbm [shape: f32[4,512], index: 0, kind: input, shape index: {}]   ;;  %s133_s1 = inlined_call_operand.hbm [shape: f32[4,512], index: 1, kind: output, shape index: {}]  }
   0x1   :  { %7 = vsyncpa [#allocation4], 0  ;;  %s96_s6 = smov [#allocation2]   ;;  %s48_s10 = scalar_lea.hbm %s132_s0, 256 }
   0x2   :  { %s14_s7 = sshll.u32 %s96_s6, 4  ;;  %p49_p0 = scmp.ne.s32.totalorder %s132_s0, %s48_s10  ;;  %s15_s7 = int_to_ptr.vmem [resolvable:$true] %s14_s7 }
   0x3   :  { %p52_p1 = scmp.lt.u32.totalorder %s48_s10, %s132_s0 }
   0x5   :  { %p54_p2 = pnand %p52_p1, %p49_p0 }
   0x7   :  { %57 = shalt.err (!%p54_p2)
}
   0x8   :  { %s58_s15 = scalar_lea.vmem %s15_s7, 256  ;;  %p63_p4 = scmp.lt.s32.totalorder %s15_s7, %s15_s7 }
   0x9   :  { %p59_p3 = scmp.ne.s32.totalorder %s15_s7, %s58_s15  ;;  %p64_p5 = scmp.lt.s32.totalorder %s58_s15, %s58_s15 }
   0xb   :  { %p65_p6 = por %p64_p5, %p63_p4 }
   0xd   :  { %p66_p7 = pnand %p65_p6, %p59_p3 }
   0xf   :  { %69 = shalt.err (!%p66_p7)
}
  0x10   :  { %17 = dma.hbm_to_vmem [thread:$0]  %s132_s0, 256, %s15_s7, [#allocation3]  }
  0x11   :  { %92 = dma.done.wait [#allocation3], 256  }
  0x12   :  { %93 = vsyncadd [#allocation3], 4294967040  ;;  %s97_s18 = smov [#allocation5]   ;;  %v21_v0 = vld [vmem:[#allocation2] sm:$0xff]  ;;  %v22_v1 = vld [vmem:[#allocation2 + $0x8] sm:$0xff] }
  0x13   :  { %s35_s19 = sshll.u32 %s97_s18, 4  ;;  %v44_v2 = vclamps-f32 %v21_v0, 1.0  ;;  %v45_v3 = vclamps-f32 %v22_v1, 1.0  ;;  %s36_s19 = int_to_ptr.vmem [resolvable:$true] %s35_s19 }
  0x14   :  { %s70_s20 = scalar_lea.vmem %s36_s19, 256  ;;  %p75_p9 = scmp.lt.s32.totalorder %s36_s19, %s36_s19 }
  0x15   :  { %27 = vst [vmem:[#allocation5] sm:$0xff] %v44_v2  ;;  %28 = vst [vmem:[#allocation5 + $0x8] sm:$0xff] %v45_v3  ;;  %p71_p8 = scmp.ne.s32.totalorder %s36_s19, %s70_s20  ;;  %p76_p10 = scmp.lt.s32.totalorder %s70_s20, %s70_s20 }
  0x17   :  { %p77_p11 = por %p76_p10, %p75_p9 }
  0x19   :  { %p78_p12 = pnand %p77_p11, %p71_p8 }
  0x1b   :  { %81 = shalt.err (!%p78_p12)
}
  0x1c   :  { %s82_s22 = scalar_lea.hbm %s133_s1, 256 }
  0x1d   :  { %p83_p13 = scmp.ne.s32.totalorder %s133_s1, %s82_s22  ;;  %p86_p0 = scmp.lt.u32.totalorder %s82_s22, %s133_s1 }
  0x1f   :  { %p88_p1 = pnand %p86_p0, %p83_p13 }
  0x21   :  { %91 = shalt.err (!%p88_p1)
}
  0x22   :  { %38 = dma.vmem_to_hbm [thread:$0]  %s36_s19, 256, %s133_s1, [#allocation4]  }
  0x23   :  { %94 = dma.done.wait [#allocation4], 256  }
  0x24   :  { %95 = vsyncadd [#allocation4], 4294967040 }
  0x25   :  { %42 = vsyncpa [#allocation3], 1 }
  0x26   :  { %43 = vsyncpa [#allocation4], 1 }

</bundles_post_ra>
